<compile_context>
chip_gen: v5e
topology: v5e:2x2
jax: 0.10.0
libtpu: 0.0.40
codegen_flags: <defaults>
</compile_context>

<pallas_src>
import jax
import jax.numpy as jnp
from jax.experimental import pallas as pl
from jax.experimental.pallas import tpu as pltpu


def mlp2_kernel(neigh_ref, x_ref, wn_ref, wc_ref, bias_ref, out_ref):
    # neigh_ref: (1, C, K, TN) bf16  gathered neighbor features (channel-major)
    # x_ref    : (1, C, TN)    bf16  center points
    # wn_ref   : (Cout, C)     bf16  BN-scaled weight applied to neighbors
    # wc_ref   : (Cout, C)     bf16  BN-scaled (W_center - W_neigh)
    # bias_ref : (Cout, 1)     f32   folded BatchNorm bias
    # out_ref  : (1, Cout, TN) f32
    wn = wn_ref[...]
    k_total = neigh_ref.shape[2]

    # Running max over neighbors: max_k (Wn @ neigh_k), each a lane-dense
    # (Cout, TN) f32 tile produced by the MXU, max-accumulated on the VPU.
    y_max = jnp.dot(wn, neigh_ref[0, :, 0, :], preferred_element_type=jnp.float32)
    for k in range(1, k_total):
        s = jnp.dot(wn, neigh_ref[0, :, k, :], preferred_element_type=jnp.float32)
        y_max = jnp.maximum(y_max, s)

    # Center contribution + folded BN bias are constant over k -> add after max.
    y = y_max + jnp.dot(wc_ref[...], x_ref[0], preferred_element_type=jnp.float32)
    y = y + bias_ref[...]
    # LeakyReLU(0.2); monotone, so max-before-activation is exact.
    out_ref[0] = jnp.where(y > 0.0, y, 0.2 * y)


def mlp2_forward(x, idx, w_t, gamma, beta, running_mean, running_var, eps=1e-5):
    """x: (B, 9, N) f32, idx: (B, N, K) int32, w_t: (18, 64). Returns (B, 64, N) f32."""
    B, C, N = x.shape
    K = idx.shape[-1]
    Cout = w_t.shape[1]

    # N tiling: whole-N block when small, otherwise lane-aligned 2048-wide tiles
    # (keeps per-step VMEM ~1-2 MiB at realistic K, fits v7x/v6e/v5e).
    TN = N if N <= 2048 else 2048
    grid_n = pl.cdiv(N, TN)

    # ---- fold BatchNorm (eval mode) into the conv weight / bias ----
    scale = (gamma / jnp.sqrt(running_var + eps)).astype(jnp.float32)      # (Cout,)
    bias = (beta - running_mean * scale).reshape(Cout, 1).astype(jnp.float32)
    wa = w_t[:C].astype(jnp.float32)     # weight half applied to (neigh - center)
    wb = w_t[C:].astype(jnp.float32)     # weight half applied to center
    wn_t = (wa * scale[None, :]).T.astype(jnp.bfloat16)                    # (Cout, C)
    wc_t = ((wb - wa) * scale[None, :]).T.astype(jnp.bfloat16)             # (Cout, C)

    # ---- gather neighbors (channel-major, N minor => lane-dense), bf16 ----
    x_b = x.astype(jnp.bfloat16)                                           # (B, C, N)
    idx_c = jnp.clip(idx, 0, N - 1).astype(jnp.int32)                      # defensive clamp
    idx_t = jnp.transpose(idx_c, (0, 2, 1)).reshape(B, 1, K * N)           # (B, 1, K*N)
    neigh = jnp.take_along_axis(x_b, idx_t, axis=2).reshape(B, C, K, N)    # (B, C, K, N)

    cost = pl.CostEstimate(
        flops=2 * B * N * (K + 1) * C * Cout,
        transcendentals=0,
        bytes_accessed=neigh.size * 2 + x_b.size * 2 + B * Cout * N * 4)

    out = pl.pallas_call(
        mlp2_kernel,
        out_shape=jax.ShapeDtypeStruct((B, Cout, N), jnp.float32),
        grid_spec=pltpu.PrefetchScalarGridSpec(
            num_scalar_prefetch=0,
            grid=(B, grid_n),
            in_specs=[
                pl.BlockSpec((1, C, K, TN), lambda b, n: (b, 0, 0, n)),
                pl.BlockSpec((1, C, TN), lambda b, n: (b, 0, n)),
                pl.BlockSpec((Cout, C), lambda b, n: (0, 0)),
                pl.BlockSpec((Cout, C), lambda b, n: (0, 0)),
                pl.BlockSpec((Cout, 1), lambda b, n: (0, 0)),
            ],
            out_specs=pl.BlockSpec((1, Cout, TN), lambda b, n: (b, 0, n)),
        ),
        compiler_params=pltpu.CompilerParams(
            dimension_semantics=("parallel", "parallel")),
        cost_estimate=cost,
    )(neigh, x_b, wn_t, wc_t, bias)

    return out                                                             # (B, 64, N)


def mlp2_reference(x, idx, w_t, gamma, beta, running_mean, running_var, eps=1e-5):
    """Pure-JAX f32 reference mirroring the PyTorch module exactly."""
    B, C, N = x.shape
    K = idx.shape[-1]
    x_t = jnp.transpose(x, (0, 2, 1))                                      # (B, N, 9)
    neigh = jnp.take_along_axis(
        x_t, idx.reshape(B, N * K)[:, :, None], axis=1).reshape(B, N, K, C)
    center = jnp.broadcast_to(x_t[:, :, None, :], (B, N, K, C))
    feat = jnp.concatenate([neigh - center, center], axis=-1)              # (B, N, K, 18)
    y = jnp.einsum("bnkc,cd->bnkd", feat, w_t)
    scale = gamma / jnp.sqrt(running_var + eps)
    bias = beta - running_mean * scale
    y = y * scale + bias
    y = jnp.where(y > 0, y, 0.2 * y)
    y = jnp.max(y, axis=2)                                                 # (B, N, 64)
    return jnp.transpose(y, (0, 2, 1))                                     # (B, 64, N)


if __name__ == "__main__":
    key = jax.random.PRNGKey(0)
    k_x, k_idx, k_w, k_g, k_b, k_m, k_v = jax.random.split(key, 7)

    B, C, N, K = 2, 9, 16, 8          # x: (B, 9, N), idx: (B, N, K)
    Cin, Cout = 2 * C, 64

    x = jax.random.normal(k_x, (B, C, N), dtype=jnp.float32)
    idx = jax.random.randint(k_idx, (B, N, K), 0, N, dtype=jnp.int32)

    # Deterministic synthetic parameters (conv weight stored transposed: (18, 64))
    w_t = jax.random.normal(k_w, (Cin, Cout), dtype=jnp.float32) * 0.1
    gamma = 1.0 + 0.1 * jax.random.normal(k_g, (Cout,), dtype=jnp.float32)
    beta = 0.1 * jax.random.normal(k_b, (Cout,), dtype=jnp.float32)
    running_mean = 0.1 * jax.random.normal(k_m, (Cout,), dtype=jnp.float32)
    running_var = 1.0 + 0.1 * jax.random.uniform(k_v, (Cout,), dtype=jnp.float32)

    out = jax.block_until_ready(
        mlp2_forward(x, idx, w_t, gamma, beta, running_mean, running_var))
    ref = mlp2_reference(x, idx, w_t, gamma, beta, running_mean, running_var)

    assert out.shape == (B, Cout, N), out.shape
    # bf16 inputs on the MXU (f32 accumulation) -> allow small numeric slack.
    assert jnp.allclose(out, ref, atol=3e-2, rtol=3e-2), \
        float(jnp.max(jnp.abs(out - ref)))

    print("KERNEL_OK")
</pallas_src>

<mosaic_0001>
module attributes {stable_mosaic.version = 11 : i64} {
  func.func @mlp2_kernel(%arg0: i32, %arg1: i32, %arg2: memref<1x9x8x16xbf16, #tpu.memory_space<vmem>>, %arg3: memref<1x9x16xbf16, #tpu.memory_space<vmem>>, %arg4: memref<64x9xbf16, #tpu.memory_space<vmem>>, %arg5: memref<64x9xbf16, #tpu.memory_space<vmem>>, %arg6: memref<64x1xf32, #tpu.memory_space<vmem>>, %arg7: memref<1x64x16xf32, #tpu.memory_space<vmem>>) attributes {dimension_semantics = [#tpu.dimension_semantics<parallel>, #tpu.dimension_semantics<parallel>], iteration_bounds = array<i64: 2, 1>, scalar_prefetch = 0 : i64, scratch_operands = 0 : i64, tpu.core_type = #tpu.core_type<tc>, window_params = [{transform_indices = @transform_0, window_bounds = array<i64: 1, 9, 8, 16>}, {transform_indices = @transform_1, window_bounds = array<i64: 1, 9, 16>}, {pipeline_mode = #tpu.pipeline_mode<synchronous>, transform_indices = @transform_2, window_bounds = array<i64: 64, 9>}, {pipeline_mode = #tpu.pipeline_mode<synchronous>, transform_indices = @transform_3, window_bounds = array<i64: 64, 9>}, {pipeline_mode = #tpu.pipeline_mode<synchronous>, transform_indices = @transform_4, window_bounds = array<i64: 64, 1>}, {transform_indices = @transform_5, window_bounds = array<i64: 1, 64, 16>}]} {
    %c0 = arith.constant 0 : index
    %c0_0 = arith.constant 0 : index
    %0 = vector.load %arg4[%c0, %c0_0] : memref<64x9xbf16, #tpu.memory_space<vmem>>, vector<64x9xbf16>
    %c0_1 = arith.constant 0 : index
    %c0_2 = arith.constant 0 : index
    %c0_3 = arith.constant 0 : index
    %c0_4 = arith.constant 0 : index
    %1 = vector.load %arg2[%c0_1, %c0_2, %c0_3, %c0_4] : memref<1x9x8x16xbf16, #tpu.memory_space<vmem>>, vector<1x9x1x16xbf16>
    %2 = vector.shape_cast %1 : vector<1x9x1x16xbf16> to vector<9x16xbf16>
    %cst = arith.constant dense<0.000000e+00> : vector<64x16xf32>
    %3 = tpu.matmul %0, %2, %cst {dimension_numbers = #tpu.dot_dimension_numbers<[1], [0], [0], [1], [0, 0, 1, 1], [], []>} : vector<64x9xbf16>, vector<9x16xbf16>, vector<64x16xf32> -> vector<64x16xf32>
    %c0_5 = arith.constant 0 : index
    %c0_6 = arith.constant 0 : index
    %c1 = arith.constant 1 : index
    %c0_7 = arith.constant 0 : index
    %4 = vector.load %arg2[%c0_5, %c0_6, %c1, %c0_7] : memref<1x9x8x16xbf16, #tpu.memory_space<vmem>>, vector<1x9x1x16xbf16>
    %5 = vector.shape_cast %4 : vector<1x9x1x16xbf16> to vector<9x16xbf16>
    %cst_8 = arith.constant dense<0.000000e+00> : vector<64x16xf32>
    %6 = tpu.matmul %0, %5, %cst_8 {dimension_numbers = #tpu.dot_dimension_numbers<[1], [0], [0], [1], [0, 0, 1, 1], [], []>} : vector<64x9xbf16>, vector<9x16xbf16>, vector<64x16xf32> -> vector<64x16xf32>
    %7 = arith.maximumf %3, %6 : vector<64x16xf32>
    %c0_9 = arith.constant 0 : index
    %c0_10 = arith.constant 0 : index
    %c2 = arith.constant 2 : index
    %c0_11 = arith.constant 0 : index
    %8 = vector.load %arg2[%c0_9, %c0_10, %c2, %c0_11] : memref<1x9x8x16xbf16, #tpu.memory_space<vmem>>, vector<1x9x1x16xbf16>
    %9 = vector.shape_cast %8 : vector<1x9x1x16xbf16> to vector<9x16xbf16>
    %cst_12 = arith.constant dense<0.000000e+00> : vector<64x16xf32>
    %10 = tpu.matmul %0, %9, %cst_12 {dimension_numbers = #tpu.dot_dimension_numbers<[1], [0], [0], [1], [0, 0, 1, 1], [], []>} : vector<64x9xbf16>, vector<9x16xbf16>, vector<64x16xf32> -> vector<64x16xf32>
    %11 = arith.maximumf %7, %10 : vector<64x16xf32>
    %c0_13 = arith.constant 0 : index
    %c0_14 = arith.constant 0 : index
    %c3 = arith.constant 3 : index
    %c0_15 = arith.constant 0 : index
    %12 = vector.load %arg2[%c0_13, %c0_14, %c3, %c0_15] : memref<1x9x8x16xbf16, #tpu.memory_space<vmem>>, vector<1x9x1x16xbf16>
    %13 = vector.shape_cast %12 : vector<1x9x1x16xbf16> to vector<9x16xbf16>
    %cst_16 = arith.constant dense<0.000000e+00> : vector<64x16xf32>
    %14 = tpu.matmul %0, %13, %cst_16 {dimension_numbers = #tpu.dot_dimension_numbers<[1], [0], [0], [1], [0, 0, 1, 1], [], []>} : vector<64x9xbf16>, vector<9x16xbf16>, vector<64x16xf32> -> vector<64x16xf32>
    %15 = arith.maximumf %11, %14 : vector<64x16xf32>
    %c0_17 = arith.constant 0 : index
    %c0_18 = arith.constant 0 : index
    %c4 = arith.constant 4 : index
    %c0_19 = arith.constant 0 : index
    %16 = vector.load %arg2[%c0_17, %c0_18, %c4, %c0_19] : memref<1x9x8x16xbf16, #tpu.memory_space<vmem>>, vector<1x9x1x16xbf16>
    %17 = vector.shape_cast %16 : vector<1x9x1x16xbf16> to vector<9x16xbf16>
    %cst_20 = arith.constant dense<0.000000e+00> : vector<64x16xf32>
    %18 = tpu.matmul %0, %17, %cst_20 {dimension_numbers = #tpu.dot_dimension_numbers<[1], [0], [0], [1], [0, 0, 1, 1], [], []>} : vector<64x9xbf16>, vector<9x16xbf16>, vector<64x16xf32> -> vector<64x16xf32>
    %19 = arith.maximumf %15, %18 : vector<64x16xf32>
    %c0_21 = arith.constant 0 : index
    %c0_22 = arith.constant 0 : index
    %c5 = arith.constant 5 : index
    %c0_23 = arith.constant 0 : index
    %20 = vector.load %arg2[%c0_21, %c0_22, %c5, %c0_23] : memref<1x9x8x16xbf16, #tpu.memory_space<vmem>>, vector<1x9x1x16xbf16>
    %21 = vector.shape_cast %20 : vector<1x9x1x16xbf16> to vector<9x16xbf16>
    %cst_24 = arith.constant dense<0.000000e+00> : vector<64x16xf32>
    %22 = tpu.matmul %0, %21, %cst_24 {dimension_numbers = #tpu.dot_dimension_numbers<[1], [0], [0], [1], [0, 0, 1, 1], [], []>} : vector<64x9xbf16>, vector<9x16xbf16>, vector<64x16xf32> -> vector<64x16xf32>
    %23 = arith.maximumf %19, %22 : vector<64x16xf32>
    %c0_25 = arith.constant 0 : index
    %c0_26 = arith.constant 0 : index
    %c6 = arith.constant 6 : index
    %c0_27 = arith.constant 0 : index
    %24 = vector.load %arg2[%c0_25, %c0_26, %c6, %c0_27] : memref<1x9x8x16xbf16, #tpu.memory_space<vmem>>, vector<1x9x1x16xbf16>
    %25 = vector.shape_cast %24 : vector<1x9x1x16xbf16> to vector<9x16xbf16>
    %cst_28 = arith.constant dense<0.000000e+00> : vector<64x16xf32>
    %26 = tpu.matmul %0, %25, %cst_28 {dimension_numbers = #tpu.dot_dimension_numbers<[1], [0], [0], [1], [0, 0, 1, 1], [], []>} : vector<64x9xbf16>, vector<9x16xbf16>, vector<64x16xf32> -> vector<64x16xf32>
    %27 = arith.maximumf %23, %26 : vector<64x16xf32>
    %c0_29 = arith.constant 0 : index
    %c0_30 = arith.constant 0 : index
    %c7 = arith.constant 7 : index
    %c0_31 = arith.constant 0 : index
    %28 = vector.load %arg2[%c0_29, %c0_30, %c7, %c0_31] : memref<1x9x8x16xbf16, #tpu.memory_space<vmem>>, vector<1x9x1x16xbf16>
    %29 = vector.shape_cast %28 : vector<1x9x1x16xbf16> to vector<9x16xbf16>
    %cst_32 = arith.constant dense<0.000000e+00> : vector<64x16xf32>
    %30 = tpu.matmul %0, %29, %cst_32 {dimension_numbers = #tpu.dot_dimension_numbers<[1], [0], [0], [1], [0, 0, 1, 1], [], []>} : vector<64x9xbf16>, vector<9x16xbf16>, vector<64x16xf32> -> vector<64x16xf32>
    %31 = arith.maximumf %27, %30 : vector<64x16xf32>
    %c0_33 = arith.constant 0 : index
    %c0_34 = arith.constant 0 : index
    %32 = vector.load %arg5[%c0_33, %c0_34] : memref<64x9xbf16, #tpu.memory_space<vmem>>, vector<64x9xbf16>
    %c0_35 = arith.constant 0 : index
    %c0_36 = arith.constant 0 : index
    %c0_37 = arith.constant 0 : index
    %33 = vector.load %arg3[%c0_35, %c0_36, %c0_37] : memref<1x9x16xbf16, #tpu.memory_space<vmem>>, vector<1x9x16xbf16>
    %34 = vector.shape_cast %33 : vector<1x9x16xbf16> to vector<9x16xbf16>
    %cst_38 = arith.constant dense<0.000000e+00> : vector<64x16xf32>
    %35 = tpu.matmul %32, %34, %cst_38 {dimension_numbers = #tpu.dot_dimension_numbers<[1], [0], [0], [1], [0, 0, 1, 1], [], []>} : vector<64x9xbf16>, vector<9x16xbf16>, vector<64x16xf32> -> vector<64x16xf32>
    %36 = arith.addf %31, %35 : vector<64x16xf32>
    %c0_39 = arith.constant 0 : index
    %c0_40 = arith.constant 0 : index
    %37 = vector.load %arg6[%c0_39, %c0_40] : memref<64x1xf32, #tpu.memory_space<vmem>>, vector<64x1xf32>
    %38 = vector.broadcast %37 : vector<64x1xf32> to vector<64x16xf32>
    %39 = arith.addf %36, %38 : vector<64x16xf32>
    %cst_41 = arith.constant 0.000000e+00 : f32
    %40 = vector.broadcast %cst_41 : f32 to vector<64x16xf32>
    %41 = arith.cmpf ogt, %39, %40 : vector<64x16xf32>
    %cst_42 = arith.constant 2.000000e-01 : f32
    %42 = vector.broadcast %cst_42 : f32 to vector<64x16xf32>
    %43 = arith.mulf %42, %39 : vector<64x16xf32>
    %44 = arith.select %41, %39, %43 : vector<64x16xi1>, vector<64x16xf32>
    %c0_43 = arith.constant 0 : index
    %c0_44 = arith.constant 0 : index
    %c0_45 = arith.constant 0 : index
    %45 = vector.load %arg7[%c0_43, %c0_44, %c0_45] : memref<1x64x16xf32, #tpu.memory_space<vmem>>, vector<1x64x16xf32>
    %46 = vector.shape_cast %45 : vector<1x64x16xf32> to vector<64x16xf32>
    %47 = vector.shape_cast %44 : vector<64x16xf32> to vector<1x64x16xf32>
    tpu.vector_store %arg7[%c0_43, %c0_44, %c0_45], %47 {strides = array<i32>} : memref<1x64x16xf32, #tpu.memory_space<vmem>>, vector<1x64x16xf32>,
    return
  }
  func.func @transform_0(%arg0: i32, %arg1: i32) -> (i32, i32, i32, i32) {
    %c0_i32 = arith.constant 0 : i32
    %c0_i32_0 = arith.constant 0 : i32
    %c0_i32_1 = arith.constant 0 : i32
    return %arg0, %c0_i32, %c0_i32_0, %arg1 : i32, i32, i32, i32
  }
  func.func @transform_1(%arg0: i32, %arg1: i32) -> (i32, i32, i32) {
    %c0_i32 = arith.constant 0 : i32
    %c0_i32_0 = arith.constant 0 : i32
    return %arg0, %c0_i32, %arg1 : i32, i32, i32
  }
  func.func @transform_2(%arg0: i32, %arg1: i32) -> (i32, i32) {
    %c0_i32 = arith.constant 0 : i32
    %c0_i32_0 = arith.constant 0 : i32
    %c0_i32_1 = arith.constant 0 : i32
    return %c0_i32, %c0_i32_0 : i32, i32
  }
  func.func @transform_3(%arg0: i32, %arg1: i32) -> (i32, i32) {
    %c0_i32 = arith.constant 0 : i32
    %c0_i32_0 = arith.constant 0 : i32
    %c0_i32_1 = arith.constant 0 : i32
    return %c0_i32, %c0_i32_0 : i32, i32
  }
  func.func @transform_4(%arg0: i32, %arg1: i32) -> (i32, i32) {
    %c0_i32 = arith.constant 0 : i32
    %c0_i32_0 = arith.constant 0 : i32
    %c0_i32_1 = arith.constant 0 : i32
    return %c0_i32, %c0_i32_0 : i32, i32
  }
  func.func @transform_5(%arg0: i32, %arg1: i32) -> (i32, i32, i32) {
    %c0_i32 = arith.constant 0 : i32
    %c0_i32_0 = arith.constant 0 : i32
    return %arg0, %c0_i32, %arg1 : i32, i32, i32
  }
}

</mosaic_0001>

<bundles_post_ra>
// kernel: tpu_custom_call.1
= control target key start
LH: loop header
LB: loop body
LE: loop exit
PB: predicated region body
PF: predicated region fallthrough
CT: control target
= control target key end

     0   :  { %s1457_s18 = smov 0   ;;  %s1459_s19 = smov 0   ;;  %s1914_s0 = inlined_call_operand.vmem [shape: bf16[2,9,8,16], index: 0, kind: input, shape index: {}]   ;;  %s1915_s1 = inlined_call_operand.vmem [shape: bf16[2,9,16], index: 1, kind: input, shape index: {}]   ;;  %s1916_s2 = inlined_call_operand.vmem [shape: bf16[64,9], index: 2, kind: input, shape index: {}]   ;;  %s1917_s3 = inlined_call_operand.vmem [shape: bf16[64,9], index: 3, kind: input, shape index: {}]   ;;  %s1918_s4 = inlined_call_operand.vmem [shape: f32[64,1], index: 4, kind: input, shape index: {}]   ;;  %s1919_s5 = inlined_call_operand.vmem [shape: f32[2,64,16], index: 5, kind: output, shape index: {}]  }
   0x1   :  { %s1461_s20 = smov 0  }
   0x2 LB: > { %s27_s21 = sadd.s32 1, %s1419_s19  ;;  %p1240_p0 = scmp.ge.s32.totalorder %s1423_s20, 1  ;;  %s1423_s20 = sphi %s1461_s20, %s15_s20   ;;  %s1419_s19 = sphi %s1459_s19, %s1921_s19   ;;  %s1415_s18 = sphi %s1457_s18, %s1920_s18  }
   0x3   : > { %p29_p1 = scmp.ge.s32.totalorder %s27_s21, 2  ;;  %p221_p2 = scmp.lt.s32.totalorder %s1423_s20, 3 }
   0x5   : > { %s1923_s21 = smov (%p29_p1, %s27_s21), 0  ;;  %p222_p3 = pnand %p1240_p0, %p221_p2 }
   0x6   : > { %p263_p4 = scmp.lt.s32.totalorder (!%p222_p3), %s1415_s18, 1 }
   0x7   : > { %225 = sbr.rel (%p222_p3) target bundleno = 318 (0x13e), region = 40 }
   0xc   : > { %vm396_vm0 = vcmask 1043456   ;;  %s1925_s18 = smov (!%p263_p4, %s1415_s18), 1  ;;  %vm397_vm1 = vcmask 1044480   ;;  %v1425_v0 = vmov 65535   ;;  %vm362_vm2 = vcmask 1041409  }
   0xd   : > { %v398_v1 = vsel %vm396_vm0, 4294967295, %v1425_v0  ;;  %s1371_s22 = smul.u32 36, %s1925_s18  ;;  %vm365_vm3 = vcmask 1042434   ;;  %vm368_vm4 = vcmask 1043459   ;;  %vm371_vm5 = vcmask 1044484   ;;  %s1357_s9 = sshll.u32 %s1925_s18, 3 }
   0xe   : > { %v1483_v2 = vsel %vm397_vm1, %v398_v1, 0  ;;  %vm374_vm6 = vcmask 1045509   ;;  %vm377_vm7 = vcmask 1046534   ;;  %vm380_vm8 = vcmask 1047559   ;;  %s278_s12 = scalar_lea.vmem %s1915_s1, %s1357_s9  ;;  %s1358_s16 = sshll.u32 %s1925_s18, 6 }
   0xf   : > { %s1481_s25 = scalar_lea.vmem %s1914_s0, %s1371_s22  ;;  %vm383_vm9 = vcmask 72704   ;;  %vm1126_vm10 = vcmask 130048   ;;  %s1864_s23 = scalar_lea.vmem %s1919_s5, %s1358_s16 }
  0x10   : > { %v296_v3 = vld [vmem:[%s1481_s25] sm:$0x1]  ;;  %v297_v4 = vld [vmem:[%s1481_s25 + $0x4] sm:$0x1]  ;;  %v298_v5 = vld [vmem:[%s1481_s25 + $0x8] sm:$0x1] }
  0x11   : > { %v299_v6 = vld [vmem:[%s1481_s25 + $0xc] sm:$0x1]  ;;  %v300_v7 = vld [vmem:[%s1481_s25 + $0x10] sm:$0x1]  ;;  %v301_v8 = vld [vmem:[%s1481_s25 + $0x14] sm:$0x1]  ;;  %v334_v9 = vunpack.c.l.b16 %v296_v3  ;;  %v335_v10 = vunpack.c.l.b16 %v297_v4  ;;  %v336_v11 = vunpack.c.l.b16 %v298_v5 }
  0x12   : > { %v302_v12 = vld [vmem:[%s1481_s25 + $0x18] sm:$0x1]  ;;  %v303_v13 = vld [vmem:[%s1481_s25 + $0x1c] sm:$0x1]  ;;  %v1494_v14 = vld [vmem:[%s1481_s25 + $0x20] sm:$0x1]  ;;  %v337_v15 = vunpack.c.l.b16 %v299_v6  ;;  %v338_v16 = vunpack.c.l.b16 %v300_v7  ;;  %v339_v17 = vunpack.c.l.b16 %v301_v8 }
  0x13   : > { %v340_v18 = vunpack.c.l.b16 %v302_v12  ;;  %v341_v19 = vunpack.c.l.b16 %v303_v13  ;;  %v342_v20 = vunpack.c.l.b16 %v1494_v14  ;;  %v1497_v21 = vunpack.i.l.s16 %v334_v9  ;;  %v488_v22 = vld [vmem:[%s1481_s25] sm:$0x2]  ;;  %v489_v27 = vld [vmem:[%s1481_s25 + $0x4] sm:$0x2]  ;;  %v490_v28 = vld [vmem:[%s1481_s25 + $0x8] sm:$0x2] }
  0x14   : > { %v1500_v23 = vunpack.i.l.s16 %v335_v10  ;;  %v1502_v24 = vunpack.i.l.s16 %v336_v11  ;;  %v1504_v25 = vunpack.i.l.s16 %v337_v15  ;;  %v1506_v26 = vunpack.i.l.s16 %v338_v16  ;;  %v491_v29 = vld [vmem:[%s1481_s25 + $0xc] sm:$0x2]  ;;  %v492_v33 = vld [vmem:[%s1481_s25 + $0x10] sm:$0x2]  ;;  %v493_v34 = vld [vmem:[%s1481_s25 + $0x14] sm:$0x2] }
  0x15   : > { %v1511_v30 = vunpack.i.l.s16 %v339_v17  ;;  %v1513_v31 = vunpack.i.l.s16 %v340_v18  ;;  %v1515_v32 = vunpack.i.l.s16 %v341_v19  ;;  %v494_v35 = vld [vmem:[%s1481_s25 + $0x18] sm:$0x2]  ;;  %v506_v36 = vunpack.c.l.b16 %v488_v22  ;;  %v495_v41 = vld [vmem:[%s1481_s25 + $0x1c] sm:$0x2]  ;;  %v496_v45 = vld [vmem:[%s1481_s25 + $0x20] sm:$0x2] }
  0x16   : > { %v361_v37 = vrot.slane %v1500_v23, 7  ;;  %v364_v38 = vrot.slane %v1502_v24, 6  ;;  %v367_v39 = vrot.slane %v1504_v25, 5  ;;  %v370_v40 = vrot.slane %v1506_v26, 4 }
  0x17   : > { %v373_v42 = vrot.slane %v1511_v30, 3  ;;  %v376_v43 = vrot.slane %v1513_v31, 2  ;;  %v379_v44 = vrot.slane %v1515_v32, 1  ;;  %v507_v46 = vunpack.c.l.b16 %v489_v27 }
  0x18   : > { %v363_v47 = vsel %vm362_vm2, %v361_v37, %v1497_v21  ;;  %v508_v48 = vunpack.c.l.b16 %v490_v28  ;;  %v509_v49 = vunpack.c.l.b16 %v491_v29  ;;  %v510_v50 = vunpack.c.l.b16 %v492_v33 }
  0x19   : > { %v366_v51 = vsel %vm365_vm3, %v364_v38, %v363_v47  ;;  %v511_v52 = vunpack.c.l.b16 %v493_v34  ;;  %v512_v53 = vunpack.c.l.b16 %v494_v35  ;;  %v513_v54 = vunpack.c.l.b16 %v495_v41  ;;  %v1552_v34 = vld [vmem:[%s1916_s2 + $0x8] sm:$0xff]  ;;  %v1557_v35 = vld [vmem:[%s1916_s2 + $0x10] sm:$0xff] }
  0x1a   : > { %v369_v55 = vsel %vm368_vm4, %v367_v39, %v366_v51  ;;  %v514_v56 = vunpack.c.l.b16 %v496_v45  ;;  %v1280_v57 = vunpack.i.l.s16 %v506_v36  ;;  %v1281_v58 = vunpack.i.l.s16 %v507_v46 }
  0x1b   : > { %v372_v59 = vsel %vm371_vm5, %v370_v40, %v369_v55  ;;  %v1282_v60 = vunpack.i.l.s16 %v508_v48  ;;  %v1283_v61 = vunpack.i.l.s16 %v509_v49  ;;  %v1284_v62 = vunpack.i.l.s16 %v510_v50  ;;  %v1564_v40 = vld [vmem:[%s1916_s2 + $0x18] sm:$0xff]  ;;  %v647_v55 = vld [vmem:[%s1481_s25 + $0x8] sm:$0x4] }
  0x1c   : > { %v375_v63 = vsel %vm374_vm6, %v373_v42, %v372_v59  ;;  %v1285_v0 = vunpack.i.l.s16 %v511_v52  ;;  %v1286_v1 = vunpack.i.l.s16 %v512_v53  ;;  %v1535_v3 = vunpack.i.l.s16 %v513_v54  ;;  %v1570_v42 = vld [vmem:[%s1916_s2] sm:$0xff]  ;;  %v649_v59 = vld [vmem:[%s1481_s25 + $0x10] sm:$0x4] }
  0x1d   : > { %v378_v4 = vsel %vm377_vm7, %v376_v43, %v375_v63  ;;  %v1538_v5 = vunpack.i.l.s16 %v514_v56  ;;  %v533_v6 = vrot.slane %v1280_v57, 2  ;;  %v534_v7 = vrot.slane %v1281_v58, 1  ;;  %v645_v54 = vld [vmem:[%s1481_s25] sm:$0x4] }
  0x1e   : > { %v381_v8 = vsel %vm380_vm8, %v379_v44, %v378_v4  ;;  %v537_v9 = vrot.slane %v1283_v61, 7  ;;  %v539_v10 = vrot.slane %v1284_v62, 6  ;;  %v541_v11 = vrot.slane %v1285_v0, 5 }
  0x1f   : > { %v1271_v12 = vpack.c.b16 %v342_v20, %v381_v8  ;;  %v535_v13 = vsel %vm362_vm2, %v534_v7, %v533_v6  ;;  %v543_v15 = vrot.slane %v1286_v1, 4  ;;  %v545_v16 = vrot.slane %v1535_v3, 3  ;;  %v652_v6 = vld [vmem:[%s1481_s25 + $0x1c] sm:$0x4] }
  0x20   : > { %v536_v17 = vsel %vm365_vm3, %v1282_v60, %v535_v13  ;;  %v547_v18 = vrot.slane %v1538_v5, 2  ;;  %v589_v19 = vrot.slane %v1280_v57, 3  ;;  %v590_v22 = vrot.slane %v1281_v58, 2 }
  0x21   : > { %v401_v27 = vand.u32 %v1271_v12, %v1483_v2  ;;  %v538_v28 = vsel %vm368_vm4, %v537_v9, %v536_v17  ;;  %v592_v29 = vrot.slane %v1282_v60, 1  ;;  %v595_v33 = vrot.slane %v1284_v62, 7 }
  0x22   : > { %v540_v36 = vsel %vm371_vm5, %v539_v10, %v538_v28  ;;  %v591_v37 = vsel %vm362_vm2, %v590_v22, %v589_v19  ;;  %v597_v38 = vrot.slane %v1285_v0, 6  ;;  %v599_v39 = vrot.slane %v1286_v1, 5  ;;  %v650_v0 = vld [vmem:[%s1481_s25 + $0x14] sm:$0x4]  ;;  %v651_v1 = vld [vmem:[%s1481_s25 + $0x18] sm:$0x4] }
  0x23   : > { %1368 = vmatpush.bf16.msra.mxu1 %v401_v27  ;;  %1369 = vmatpush.bf16.msra.mxu2 %v401_v27  ;;  %v542_v41 = vsel %vm374_vm6, %v541_v11, %v540_v36  ;;  %v593_v43 = vsel %vm365_vm3, %v592_v29, %v591_v37  ;;  %v601_v44 = vrot.slane %v1535_v3, 4  ;;  %v603_v45 = vrot.slane %v1538_v5, 3 }
  0x24   : > { %1370 = vmatpush.bf16.msra.mxu3 %v401_v27  ;;  %410 = vmatpush.bf16.msra.mxu0 %v401_v27  ;;  %v544_v46 = vsel %vm377_vm7, %v543_v15, %v542_v41  ;;  %v594_v47 = vsel %vm368_vm4, %v1283_v61, %v593_v43  ;;  %v1270_v48 = vunpack.i.l.s16 %v342_v20  ;;  %v432_v49 = vrot.slane %v1497_v21, 1  ;;  %v802_v43 = vld [vmem:[%s1481_s25] sm:$0x8] }
  0x25   : > { %v546_v50 = vsel %vm380_vm8, %v545_v16, %v544_v46  ;;  %v596_v51 = vsel %vm371_vm5, %v595_v33, %v594_v47  ;;  %v434_v52 = vrot.slane %v1502_v24, 7  ;;  %v436_v53 = vrot.slane %v1504_v25, 6  ;;  %v646_v25 = vld [vmem:[%s1481_s25 + $0x4] sm:$0x4] }
  0x26   : > { %1273 = vmatmul.msk.bf16.vlgmr.msra.gmra.mxu1 %vm383_vm9, %v1552_v34  ;;  %1274 = vmatmul.msk.bf16.vlgmr.msra.gmra.mxu2 %vm383_vm9, %v1557_v35  ;;  %v548_v14 = vpack.c.b16 %v547_v18, %v546_v50  ;;  %v598_v20 = vsel %vm374_vm6, %v597_v38, %v596_v51  ;;  %v433_v21 = vsel %vm362_vm2, %v1500_v23, %v432_v49  ;;  %v438_v24 = vrot.slane %v1506_v26, 5  ;;  %v648_v26 = vld [vmem:[%s1481_s25 + $0xc] sm:$0x4]  ;;  %v804_v49 = vld [vmem:[%s1481_s25 + $0x8] sm:$0x8] }
  0x27   : > { %1275 = vmatmul.msk.bf16.vlgmr.msra.gmra.mxu3 %vm383_vm9, %v1564_v40  ;;  %1272 = vmatmul.msk.bf16.vlgmr.msra.gmra.mxu0 %vm383_vm9, %v1570_v42  ;;  %v600_v56 = vsel %vm377_vm7, %v599_v39, %v598_v20  ;;  %v435_v57 = vsel %vm365_vm3, %v434_v52, %v433_v21  ;;  %v440_v23 = vrot.slane %v1511_v30, 4  ;;  %v442_v58 = vrot.slane %v1513_v31, 3  ;;  %v653_v30 = vld [vmem:[%s1481_s25 + $0x20] sm:$0x4]  ;;  %v805_v50 = vld [vmem:[%s1481_s25 + $0xc] sm:$0x8] }
  0x28   : > { %v550_v60 = vand.u32 %v548_v14, %v1483_v2  ;;  %v602_v61 = vsel %vm380_vm8, %v601_v44, %v600_v56  ;;  %v437_v62 = vsel %vm368_vm4, %v436_v53, %v435_v57  ;;  %v444_v63 = vrot.slane %v1515_v32, 2  ;;  %v803_v44 = vld [vmem:[%s1481_s25 + $0x4] sm:$0x8]  ;;  %v806_v51 = vld [vmem:[%s1481_s25 + $0x10] sm:$0x8] }
  0x29   : > { %v604_v3 = vpack.c.b16 %v603_v45, %v602_v61  ;;  %v439_v4 = vsel %vm371_vm5, %v438_v24, %v437_v62  ;;  %v446_v5 = vrot.slane %v1270_v48, 1  ;;  %v663_v7 = vunpack.c.l.b16 %v645_v54  ;;  %v807_v20 = vld [vmem:[%s1481_s25 + $0x14] sm:$0x8]  ;;  %v808_v56 = vld [vmem:[%s1481_s25 + $0x18] sm:$0x8] }
  0x2a   : > { %559 = vmatpush.bf16.msrb.mxu2 %v550_v60  ;;  %v441_v31 = vsel %vm374_vm6, %v440_v23, %v439_v4  ;;  %v664_v8 = vunpack.c.l.b16 %v646_v25  ;;  %v665_v9 = vunpack.c.l.b16 %v647_v55  ;;  %v666_v10 = vunpack.c.l.b16 %v648_v26  ;;  %v810_v62 = vld [vmem:[%s1481_s25 + $0x20] sm:$0x8] }
  0x2b   : > { %v606_v11 = vand.u32 %v604_v3, %v1483_v2  ;;  %v443_v12 = vsel %vm377_vm7, %v442_v58, %v441_v31  ;;  %v667_v32 = vunpack.c.l.b16 %v649_v59  ;;  %v668_v13 = vunpack.c.l.b16 %v650_v0  ;;  %v809_v59 = vld [vmem:[%s1481_s25 + $0x1c] sm:$0x8] }
  0x2c   : > { %v445_v15 = vsel %vm380_vm8, %v444_v63, %v443_v12  ;;  %v669_v16 = vunpack.c.l.b16 %v651_v1  ;;  %v670_v17 = vunpack.c.l.b16 %v652_v6  ;;  %v671_v18 = vunpack.c.l.b16 %v653_v30 }
  0x2d   : > { %615 = vmatpush.bf16.msrb.mxu3 %v606_v11  ;;  %v447_v19 = vpack.c.b16 %v446_v5, %v445_v15  ;;  %v1618_v22 = vunpack.i.l.s16 %v663_v7  ;;  %v1620_v27 = vunpack.i.l.s16 %v664_v8  ;;  %v1622_v28 = vunpack.i.l.s16 %v665_v9 }
  0x2e   : > { %v1624_v29 = vunpack.i.l.s16 %v666_v10  ;;  %v1626_v33 = vunpack.i.l.s16 %v668_v13  ;;  %v1628_v36 = vunpack.i.l.s16 %v669_v16  ;;  %v1631_v38 = vunpack.i.l.s16 %v670_v17 }
  0x2f   : > { %v449_v37 = vand.u32 %v447_v19, %v1483_v2  ;;  %v1633_v39 = vunpack.i.l.s16 %v671_v18  ;;  %v690_v41 = vrot.slane %v1618_v22, 4  ;;  %v1638_v45 = vunpack.i.l.s16 %v667_v32 }
  0x30   : > { %v691_v46 = vrot.slane %v1620_v27, 3  ;;  %v693_v47 = vrot.slane %v1622_v28, 2  ;;  %v695_v48 = vrot.slane %v1624_v29, 1  ;;  %v698_v52 = vrot.slane %v1626_v33, 7 }
  0x31   : > { %458 = vmatpush.bf16.msrb.mxu1 %v449_v37  ;;  %v700_v53 = vrot.slane %v1628_v36, 6  ;;  %v702_v54 = vrot.slane %v1631_v38, 5  ;;  %v704_v14 = vrot.slane %v1633_v39, 4  ;;  %v746_v24 = vrot.slane %v1618_v22, 5 }
  0x32   : > { %v692_v21 = vsel %vm362_vm2, %v691_v46, %v690_v41  ;;  %v747_v25 = vrot.slane %v1620_v27, 4  ;;  %v749_v55 = vrot.slane %v1622_v28, 3  ;;  %v751_v23 = vrot.slane %v1624_v29, 2 }
  0x33   : > { %v694_v57 = vsel %vm365_vm3, %v693_v47, %v692_v21  ;;  %v753_v58 = vrot.slane %v1638_v45, 1  ;;  %v756_v26 = vrot.slane %v1628_v36, 7  ;;  %v758_v61 = vrot.slane %v1631_v38, 6 }
  0x34   : > { %v696_v60 = vsel %vm368_vm4, %v695_v48, %v694_v57  ;;  %v820_v63 = vunpack.c.l.b16 %v802_v43  ;;  %v821_v0 = vunpack.c.l.b16 %v803_v44  ;;  %v822_v3 = vunpack.c.l.b16 %v804_v49 }
  0x35   : > { %v697_v1 = vsel %vm371_vm5, %v1638_v45, %v696_v60  ;;  %v823_v4 = vunpack.c.l.b16 %v805_v50  ;;  %v824_v5 = vunpack.c.l.b16 %v806_v51  ;;  %v825_v30 = vunpack.c.l.b16 %v807_v20 }
  0x36   : > { %v699_v6 = vsel %vm374_vm6, %v698_v52, %v697_v1  ;;  %1276 = vmatmul.msk.bf16.vlgmr.msrb.gmra.mxu1 %vm383_vm9, %v1570_v42  ;;  %1289 = vmatmul.msk.bf16.vlgmr.msrb.gmra.mxu2 %vm383_vm9, %v1570_v42  ;;  %v826_v7 = vunpack.c.l.b16 %v808_v56  ;;  %v827_v31 = vunpack.c.l.b16 %v809_v59  ;;  %v828_v9 = vunpack.c.l.b16 %v810_v62  ;;  %v1367_v56 = vld [vmem:[%s278_s12] sm:$0x10] }
  0x37   : > { %v701_v8 = vsel %vm377_vm7, %v700_v53, %v699_v6  ;;  %1293 = vmatmul.msk.bf16.vlgmr.msrb.gmra.mxu3 %vm383_vm9, %v1570_v42  ;;  %v1314_v10 = vunpack.i.l.s16 %v820_v63  ;;  %v1315_v11 = vunpack.i.l.s16 %v821_v0  ;;  %v1316_v32 = vunpack.i.l.s16 %v822_v3  ;;  %v1349_v53 = vld [vmem:[%s278_s12] sm:$0xf] }
  0x38   : > { %v703_v12 = vsel %vm380_vm8, %v702_v54, %v701_v8  ;;  %v1317_v13 = vunpack.i.l.s16 %v823_v4  ;;  %v1318_v15 = vunpack.i.l.s16 %v824_v5  ;;  %v760_v17 = vrot.slane %v1633_v39, 5 }
  0x39   : > { %v705_v16 = vpack.c.b16 %v704_v14, %v703_v12  ;;  %v1319_v18 = vunpack.i.l.s16 %v825_v30  ;;  %v1321_v19 = vunpack.i.l.s16 %v827_v31  ;;  %v1322_v37 = vunpack.i.l.s16 %v828_v9 }
  0x3a   : > { %v847_v41 = vrot.slane %v1314_v10, 6  ;;  %v848_v43 = vrot.slane %v1315_v11, 5  ;;  %v850_v44 = vrot.slane %v1316_v32, 4  ;;  %v1320_v47 = vunpack.i.l.s16 %v826_v7 }
  0x3b   : > { %v707_v46 = vand.u32 %v705_v16, %v1483_v2  ;;  %v852_v48 = vrot.slane %v1317_v13, 3  ;;  %v854_v49 = vrot.slane %v1318_v15, 2  ;;  %v856_v51 = vrot.slane %v1319_v18, 1  ;;  %v1053_v16 = vld [vmem:[%s1918_s4 + $0x38] sm:$0xff] }
  0x3c   : > { %v849_v50 = vsel %vm362_vm2, %v848_v43, %v847_v41  ;;  %v859_v52 = vrot.slane %v1321_v19, 7  ;;  %v903_v39 = vrot.slane %v1314_v10, 7  ;;  %v904_v14 = vrot.slane %v1315_v11, 6 }
  0x3d   : > { %716 = vmatpush.bf16.msrb.mxu0 %v707_v46  ;;  %v851_v54 = vsel %vm365_vm3, %v850_v44, %v849_v50  ;;  %v906_v20 = vrot.slane %v1316_v32, 5  ;;  %v908_v21 = vrot.slane %v1317_v13, 4  ;;  %v861_v59 = vrot.slane %v1322_v37, 6  ;;  %v1048_v13 = vld [vmem:[%s1918_s4 + $0x10] sm:$0xff]  ;;  %v1366_v44 = vld [vmem:[%s1917_s3 + $0x18] sm:$0xff]  ;;  %v1051_v46 = vld [vmem:[%s1918_s4 + $0x28] sm:$0xff] }
  0x3e   : > { %v853_v57 = vsel %vm368_vm4, %v852_v48, %v851_v54  ;;  %v910_v60 = vrot.slane %v1318_v15, 3  ;;  %v912_v62 = vrot.slane %v1319_v18, 2  ;;  %v905_v0 = vsel %vm362_vm2, %v904_v14, %v903_v39  ;;  %v1364_v15 = vld [vmem:[%s1917_s3 + $0x8] sm:$0xff] }
  0x3f   : > { %v855_v63 = vsel %vm371_vm5, %v854_v49, %v853_v57  ;;  %v914_v1 = vrot.slane %v1320_v47, 1  ;;  %v748_v3 = vsel %vm362_vm2, %v747_v25, %v746_v24  ;;  %v907_v5 = vsel %vm365_vm3, %v906_v20, %v905_v0 }
  0x40   : > { %v857_v4 = vsel %vm374_vm6, %v856_v51, %v855_v63  ;;  %1306 = vmatmul.msk.bf16.vlgmr.msrb.gmra.mxu0 %vm383_vm9, %v1570_v42  ;;  %v750_v6 = vsel %vm365_vm3, %v749_v55, %v748_v3  ;;  %v1350_v30 = vor.u32 %v1367_v56, %v1349_v53  ;;  %v909_v22 = vsel %vm368_vm4, %v908_v21, %v907_v5 }
  0x41   : > { %v858_v7 = vsel %vm377_vm7, %v1320_v47, %v857_v4  ;;  %v917_v31 = vrot.slane %v1322_v37, 7  ;;  %v752_v27 = vsel %vm368_vm4, %v751_v23, %v750_v6  ;;  %v911_v25 = vsel %vm371_vm5, %v910_v60, %v909_v22 }
  0x42   : > { %v860_v24 = vsel %vm380_vm8, %v859_v52, %v858_v7  ;;  %v754_v28 = vsel %vm371_vm5, %v753_v58, %v752_v27  ;;  %v1007_v55 = vand.u32 %v1350_v30, %v1483_v2  ;;  %v913_v9 = vsel %vm374_vm6, %v912_v62, %v911_v25 }
  0x43   : > { %v862_v8 = vpack.c.b16 %v861_v59, %v860_v24  ;;  %v755_v10 = vsel %vm374_vm6, %v1626_v33, %v754_v28  ;;  %v915_v29 = vsel %vm377_vm7, %v914_v1, %v913_v9  ;;  %v1426_v38 = vmov 0  }
  0x44   : > { %v757_v23 = vsel %vm377_vm7, %v756_v26, %v755_v10  ;;  %1016 = vmatpush.bf16.msra.mxu0 %v1007_v55  ;;  %v916_v45 = vsel %vm380_vm8, %v1321_v19, %v915_v29  ;;  %1398 = vset.pattern.permute.xlu0 %v1426_v38  ;;  %v1047_v26 = vld [vmem:[%s1918_s4 + $0x8] sm:$0xff]  ;;  %v1050_v19 = vld [vmem:[%s1918_s4 + $0x20] sm:$0xff] }
  0x45   : > { %v864_v11 = vand.u32 %v862_v8, %v1483_v2  ;;  %v759_v58 = vsel %vm380_vm8, %v758_v61, %v757_v23  ;;  %v918_v12 = vpack.c.b16 %v917_v31, %v916_v45  ;;  %1399 = vset.pattern.permute.xlu1 %v1426_v38  ;;  %1400 = vset.pattern.permute.xlu2 %v1426_v38  ;;  %v1363_v61 = vld [vmem:[%s1917_s3] sm:$0xff] }
  0x46   : > { %v761_v32 = vpack.c.b16 %v760_v17, %v759_v58  ;;  %1277 = vmatmul.msk.bf16.gmra.mxu1 %vm383_vm9, %v1552_v34  ;;  %1290 = vmatmul.msk.bf16.gmra.mxu2 %vm383_vm9, %v1552_v34  ;;  %v1052_v17 = vld [vmem:[%s1918_s4 + $0x30] sm:$0xff] }
  0x47   : > { %873 = vmatpush.bf16.msra.mxu2 %v864_v11  ;;  %1294 = vmatmul.msk.bf16.gmra.mxu3 %vm383_vm9, %v1552_v34  ;;  %v920_v33 = vand.u32 %v918_v12, %v1483_v2 }
  0x48   : > { %v763_v36 = vand.u32 %v761_v32, %v1483_v2  ;;  %v1046_v2 = vld [vmem:[%s1918_s4] sm:$0xff]  ;;  %1066 = vperm.xlu1 %1399, %v1048_v13   ;;  %1076 = vperm.xlu2 %1400, %v1050_v19  }
  0x49   : > { %929 = vmatpush.bf16.msra.mxu3 %v920_v33  ;;  %1056 = vperm.xlu0 %1398, %v1046_v2  }
  0x4a   : > { %772 = vmatpush.bf16.msra.mxu1 %v763_v36 }
  0x50   : > { %1307 = vmatmul.msk.bf16.gmra.mxu0 %vm383_vm9, %v1552_v34  ;;  %1081 = vperm.xlu2 %1400, %v1051_v46  }
  0x51   : > { %1061 = vperm.xlu0 %1398, %v1047_v26  }
  0x56   : > { %1278 = vmatmul.msk.bf16.gmra.mxu1 %vm383_vm9, %v1557_v35  ;;  %1291 = vmatmul.msk.bf16.gmra.mxu2 %vm383_vm9, %v1557_v35 }
  0x57   : > { %1295 = vmatmul.msk.bf16.gmra.mxu3 %vm383_vm9, %v1557_v35 }
  0x59   : > { %1086 = vperm.xlu0 %1398, %v1052_v17  }
  0x60   : > { %1308 = vmatmul.msk.bf16.gmra.mxu0 %vm383_vm9, %v1557_v35 }
  0x66   : > { %1279 = vmatmul.msk.bf16.gmra.mxu1 %vm383_vm9, %v1564_v40  ;;  %1292 = vmatmul.msk.bf16.gmra.mxu2 %vm383_vm9, %v1564_v40 }
  0x67   : > { %1296 = vmatmul.msk.bf16.gmra.mxu3 %vm383_vm9, %v1564_v40 }
  0x70   : > { %1309 = vmatmul.msk.bf16.gmra.mxu0 %vm383_vm9, %v1564_v40 }
  0x76   : > { %1310 = vmatmul.msk.bf16.vlgmr.msra.gmra.mxu1 %vm383_vm9, %v1570_v42  ;;  %1323 = vmatmul.msk.bf16.vlgmr.msra.gmra.mxu2 %vm383_vm9, %v1570_v42 }
  0x77   : > { %1327 = vmatmul.msk.bf16.vlgmr.msra.gmra.mxu3 %vm383_vm9, %v1570_v42  ;;  %v1049_v42 = vld [vmem:[%s1918_s4 + $0x18] sm:$0xff] }
  0x78   : > { %1071 = vperm.xlu1 %1399, %v1049_v42  }
  0x80   : > { %1351 = vmatmul.msk.bf16.vlgmr.msra.gmra.mxu0 %vm383_vm9, %v1363_v61  ;;  %1091 = vperm.xlu1 %1399, %v1053_v16  }
  0x86   : > { %1311 = vmatmul.msk.bf16.gmra.mxu1 %vm383_vm9, %v1552_v34  ;;  %1324 = vmatmul.msk.bf16.gmra.mxu2 %vm383_vm9, %v1552_v34 }
  0x87   : > { %1328 = vmatmul.msk.bf16.gmra.mxu3 %vm383_vm9, %v1552_v34  ;;  %v1365_v34 = vld [vmem:[%s1917_s3 + $0x10] sm:$0xff] }
  0x90   : > { %1352 = vmatmul.msk.bf16.gmra.mxu0 %vm383_vm9, %v1364_v15 }
  0x96   : > { %1312 = vmatmul.msk.bf16.gmra.mxu1 %vm383_vm9, %v1557_v35  ;;  %1325 = vmatmul.msk.bf16.gmra.mxu2 %vm383_vm9, %v1557_v35 }
  0x97   : > { %1329 = vmatmul.msk.bf16.gmra.mxu3 %vm383_vm9, %v1557_v35 }
  0xa0   : > { %1353 = vmatmul.msk.bf16.gmra.mxu0 %vm383_vm9, %v1365_v34 }
  0xa3   : > { %v1795_v18 = vpop.f32.mrf.mxu1 }
  0xa4   : > { %v412_v35 = vpop.f32.mrf.mxu0 }
  0xa6   : > { %1313 = vmatmul.msk.bf16.gmra.mxu1 %vm383_vm9, %v1564_v40  ;;  %1326 = vmatmul.msk.bf16.gmra.mxu2 %vm383_vm9, %v1564_v40 }
  0xa7   : > { %1330 = vmatmul.msk.bf16.gmra.mxu3 %vm383_vm9, %v1564_v40 }
  0xa9   : > { %v1806_v37 = vpop.f32.mrf.mxu2 }
  0xaa   : > { %v1808_v41 = vpop.f32.mrf.mxu3 }
  0xab   : > { %v1810_v43 = vpop.f32.mrf.mxu1 }
  0xac   : > { %v414_v48 = vpop.f32.mrf.mxu0 }
  0xb0   : > { %1354 = vmatmul.msk.bf16.gmra.mxu0 %vm383_vm9, %v1366_v44 }
  0xb1   : > { %v1819_v40 = vpop.f32.mrf.mxu2 }
  0xb2   : > { %v1821_v47 = vpop.f32.mrf.mxu3 }
  0xb3   : > { %v460_v49 = vpop.f32.mrf.mxu1 }
  0xb4   : > { %v480_v25 = vmax.f32 %v412_v35, %v460_v49 }
  0xb9   : > { %v561_v50 = vpop.f32.mrf.mxu2 }
  0xba   : > { %v617_v51 = vpop.f32.mrf.mxu3  ;;  %v581_v55 = vmax.f32 %v480_v25, %v561_v50 }
  0xbb   : > { %v462_v52 = vpop.f32.mrf.mxu1  ;;  %v1057_v61 = vpop.permute.xlu0 %1056 }
  0xbc   : > { %v637_v9 = vmax.f32 %v581_v55, %v617_v51  ;;  %v481_v23 = vmax.f32 %v414_v48, %v462_v52 }
  0xbd   : > { %v718_v39 = vpop.f32.mrf.mxu0 }
  0xbe   : > { %v738_v58 = vmax.f32 %v637_v9, %v718_v39 }
  0xc1   : > { %v563_v53 = vpop.f32.mrf.mxu2 }
  0xc2   : > { %v619_v54 = vpop.f32.mrf.mxu3  ;;  %v582_v45 = vmax.f32 %v481_v23, %v563_v53 }
  0xc3   : > { %v465_v14 = vpop.f32.mrf.mxu1  ;;  %v1062_v53 = vpop.permute.xlu0 %1061 }
  0xc4   : > { %v638_v33 = vmax.f32 %v582_v45, %v619_v54  ;;  %v482_v38 = vmax.f32 %v1795_v18, %v465_v14 }
  0xc5   : > { %v720_v20 = vpop.f32.mrf.mxu0 }
  0xc6   : > { %v739_v16 = vmax.f32 %v638_v33, %v720_v20 }
  0xc9   : > { %v566_v21 = vpop.f32.mrf.mxu2 }
  0xca   : > { %v622_v56 = vpop.f32.mrf.mxu3  ;;  %v583_v42 = vmax.f32 %v482_v38, %v566_v21 }
  0xcb   : > { %v467_v57 = vpop.f32.mrf.mxu1 }
  0xcc   : > { %v639_v35 = vmax.f32 %v583_v42, %v622_v56  ;;  %v483_v50 = vmax.f32 %v1810_v43, %v467_v57  ;;  %v1067_v57 = vpop.permute.xlu1 %1066 }
  0xcd   : > { %v723_v59 = vpop.f32.mrf.mxu0 }
  0xce   : > { %v740_v14 = vmax.f32 %v639_v35, %v723_v59 }
  0xd1   : > { %v568_v60 = vpop.f32.mrf.mxu2 }
  0xd2   : > { %v1823_v62 = vpop.f32.mrf.mxu3  ;;  %v584_v54 = vmax.f32 %v483_v50, %v568_v60 }
  0xd3   : > { %v1825_v63 = vpop.f32.mrf.mxu1 }
  0xd4   : > { %v640_v55 = vmax.f32 %v584_v54, %v1823_v62  ;;  %v484_v45 = vmax.f32 %v1806_v37, %v1825_v63 }
  0xd5   : > { %v1827_v0 = vpop.f32.mrf.mxu0 }
  0xd9   : > { %v1829_v1 = vpop.f32.mrf.mxu2 }
  0xda   : > { %v1831_v3 = vpop.f32.mrf.mxu3  ;;  %v585_v59 = vmax.f32 %v484_v45, %v1829_v1 }
  0xdb   : > { %v1833_v4 = vpop.f32.mrf.mxu1 }
  0xdc   : > { %v641_v38 = vmax.f32 %v585_v59, %v1831_v3 }
  0xdd   : > { %v1835_v5 = vpop.f32.mrf.mxu0 }
  0xe1   : > { %v1837_v6 = vpop.f32.mrf.mxu2 }
  0xe2   : > { %v1839_v30 = vpop.f32.mrf.mxu3 }
  0xe3   : > { %v1841_v7 = vpop.f32.mrf.mxu1 }
  0xe5   : > { %v1843_v22 = vpop.f32.mrf.mxu0 }
  0xe9   : > { %v1845_v31 = vpop.f32.mrf.mxu2 }
  0xea   : > { %v1847_v27 = vpop.f32.mrf.mxu3 }
  0xeb   : > { %v1849_v24 = vpop.f32.mrf.mxu1 }
  0xed   : > { %v1851_v28 = vpop.f32.mrf.mxu0 }
  0xf1   : > { %v1853_v8 = vpop.f32.mrf.mxu2 }
  0xf2   : > { %v1855_v10 = vpop.f32.mrf.mxu3 }
  0xf3   : > { %v774_v29 = vpop.f32.mrf.mxu1 }
  0xf4   : > { %v794_v12 = vmax.f32 %v738_v58, %v774_v29 }
  0xf5   : > { %v1857_v11 = vpop.f32.mrf.mxu0 }
  0xf9   : > { %v875_v32 = vpop.f32.mrf.mxu2 }
  0xfa   : > { %v895_v36 = vmax.f32 %v794_v12, %v875_v32  ;;  %v931_v2 = vpop.f32.mrf.mxu3  ;;  %v741_v32 = vmax.f32 %v640_v55, %v1827_v0  ;;  %v1072_v0 = vpop.permute.xlu1 %1071 }
  0xfb   : > { %v776_v26 = vpop.f32.mrf.mxu1 }
  0xfc   : > { %v951_v13 = vmax.f32 %v895_v36, %v931_v2  ;;  %v795_v34 = vmax.f32 %v739_v16, %v776_v26 }
  0xfd   : > { %v1018_v15 = vpop.f32.mrf.mxu0 }
  0xfe   : > { %v1038_v17 = vadd.f32 %v1018_v15, %v951_v13  ;;  %v485_v13 = vmax.f32 %v1819_v40, %v1833_v4 }
 0x100   : > { %v1094_v19 = vadd.f32 %v1057_v61, %v1038_v17  ;;  %v586_v16 = vmax.f32 %v485_v13, %v1837_v6  ;;  %v742_v17 = vmax.f32 %v641_v38, %v1835_v5 }
 0x101   : > { %v877_v44 = vpop.f32.mrf.mxu2 }
 0x102   : > { %vm1102_vm11 = vcmp.gt.f32.partialorder %v1094_v19, 0.0  ;;  %v1110_v18 = vmul.f32 0.2, %v1094_v19  ;;  %v896_v46 = vmax.f32 %v795_v34, %v877_v44  ;;  %v933_v48 = vpop.f32.mrf.mxu3  ;;  %v642_v44 = vmax.f32 %v586_v16, %v1839_v30 }
 0x103   : > { %v779_v49 = vpop.f32.mrf.mxu1 }
 0x104   : > { %v1118_v51 = vsel %vm1102_vm11, %v1094_v19, %v1110_v18  ;;  %v952_v52 = vmax.f32 %v896_v46, %v933_v48  ;;  %v796_v21 = vmax.f32 %v740_v14, %v779_v49  ;;  %v1077_v48 = vpop.permute.xlu2 %1076  ;;  %v486_v49 = vmax.f32 %v1808_v41, %v1841_v7 }
 0x105   : > { %v1020_v39 = vpop.f32.mrf.mxu0  ;;  %1127 = vst.msk [vmem:[%s1864_s23] sm:$0xff] %vm1126_vm10, %v1118_v51 }
 0x106   : > { %v1039_v20 = vadd.f32 %v1020_v39, %v952_v52  ;;  %v587_v5 = vmax.f32 %v486_v49, %v1845_v31  ;;  %v743_v52 = vmax.f32 %v642_v44, %v1843_v22 }
 0x108   : > { %v1095_v56 = vadd.f32 %v1062_v53, %v1039_v20  ;;  %v643_v14 = vmax.f32 %v587_v5, %v1847_v27 }
 0x109   : > { %v880_v25 = vpop.f32.mrf.mxu2 }
 0x10a   : > { %vm1103_vm12 = vcmp.gt.f32.partialorder %v1095_v56, 0.0  ;;  %v1111_v9 = vmul.f32 0.2, %v1095_v56  ;;  %v897_v29 = vmax.f32 %v796_v21, %v880_v25  ;;  %v936_v23 = vpop.f32.mrf.mxu3 }
 0x10b   : > { %v781_v43 = vpop.f32.mrf.mxu1 }
 0x10c   : > { %v1119_v58 = vsel %vm1103_vm12, %v1095_v56, %v1111_v9  ;;  %v953_v12 = vmax.f32 %v897_v29, %v936_v23  ;;  %v797_v33 = vmax.f32 %v741_v32, %v781_v43  ;;  %v487_v56 = vmax.f32 %v1821_v47, %v1849_v24  ;;  %v1082_v22 = vpop.permute.xlu2 %1081 }
 0x10d   : > { %v1023_v60 = vpop.f32.mrf.mxu0  ;;  %1128 = vst.msk [vmem:[%s1864_s23 + $0x8] sm:$0xff] %vm1126_vm10, %v1119_v58  ;;  %v744_v29 = vmax.f32 %v643_v14, %v1851_v28 }
 0x10e   : > { %v1040_v62 = vadd.f32 %v1023_v60, %v953_v12  ;;  %v588_v9 = vmax.f32 %v487_v56, %v1853_v8 }
 0x110   : > { %v1096_v36 = vadd.f32 %v1067_v57, %v1040_v62  ;;  %v644_v45 = vmax.f32 %v588_v9, %v1855_v10  ;;  %v1087_v62 = vpop.permute.xlu0 %1086 }
 0x111   : > { %v882_v2 = vpop.f32.mrf.mxu2 }
 0x112   : > { %vm1104_vm13 = vcmp.gt.f32.partialorder %v1096_v36, 0.0  ;;  %v1112_v26 = vmul.f32 0.2, %v1096_v36  ;;  %v898_v61 = vmax.f32 %v797_v33, %v882_v2  ;;  %v938_v37 = vpop.f32.mrf.mxu3  ;;  %v745_v28 = vmax.f32 %v644_v45, %v1857_v11 }
 0x113   : > { %v784_v63 = vpop.f32.mrf.mxu1 }
 0x114   : > { %v1120_v42 = vsel %vm1104_vm13, %v1096_v36, %v1112_v26  ;;  %v954_v15 = vmax.f32 %v898_v61, %v938_v37  ;;  %v798_v34 = vmax.f32 %v742_v17, %v784_v63 }
 0x115   : > { %v1025_v1 = vpop.f32.mrf.mxu0  ;;  %1129 = vst.msk [vmem:[%s1864_s23 + $0x10] sm:$0xff] %vm1126_vm10, %v1120_v42  ;;  %v1092_v42 = vpop.permute.xlu1 %1091 }
 0x116   : > { %v1041_v3 = vadd.f32 %v1025_v1, %v954_v15 }
 0x118   : > { %v1097_v19 = vadd.f32 %v1072_v0, %v1041_v3 }
 0x119   : > { %v885_v35 = vpop.f32.mrf.mxu2 }
 0x11a   : > { %vm1105_vm14 = vcmp.gt.f32.partialorder %v1097_v19, 0.0  ;;  %v1113_v18 = vmul.f32 0.2, %v1097_v19  ;;  %v899_v40 = vmax.f32 %v798_v34, %v885_v35  ;;  %v941_v4 = vpop.f32.mrf.mxu3 }
 0x11b   : > { %v786_v46 = vpop.f32.mrf.mxu1 }
 0x11c   : > { %v1121_v50 = vsel %vm1105_vm14, %v1097_v19, %v1113_v18  ;;  %v955_v6 = vmax.f32 %v899_v40, %v941_v4  ;;  %v799_v39 = vmax.f32 %v743_v52, %v786_v46 }
 0x11d   : > { %v1028_v51 = vpop.f32.mrf.mxu0  ;;  %1130 = vst.msk [vmem:[%s1864_s23 + $0x18] sm:$0xff] %vm1126_vm10, %v1121_v50 }
 0x11e   : > { %v1042_v30 = vadd.f32 %v1028_v51, %v955_v6 }
 0x120   : > { %v1098_v53 = vadd.f32 %v1077_v48, %v1042_v30 }
 0x121   : > { %v887_v54 = vpop.f32.mrf.mxu2 }
 0x122   : > { %vm1106_vm15 = vcmp.gt.f32.partialorder %v1098_v53, 0.0  ;;  %v1114_v20 = vmul.f32 0.2, %v1098_v53  ;;  %v900_v21 = vmax.f32 %v799_v39, %v887_v54  ;;  %v943_v41 = vpop.f32.mrf.mxu3 }
 0x123   : > { %v789_v7 = vpop.f32.mrf.mxu1 }
 0x124   : > { %v1122_v25 = vsel %vm1106_vm15, %v1098_v53, %v1114_v20  ;;  %v956_v55 = vmax.f32 %v900_v21, %v943_v41  ;;  %v800_v23 = vmax.f32 %v744_v29, %v789_v7 }
 0x125   : > { %v1030_v31 = vpop.f32.mrf.mxu0  ;;  %1131 = vst.msk [vmem:[%s1864_s23 + $0x20] sm:$0xff] %vm1126_vm10, %v1122_v25 }
 0x126   : > { %v1043_v27 = vadd.f32 %v1030_v31, %v956_v55 }
 0x128   : > { %v1099_v43 = vadd.f32 %v1082_v22, %v1043_v27 }
 0x129   : > { %v890_v57 = vpop.f32.mrf.mxu2 }
 0x12a   : > { %vm1107_vm0 = vcmp.gt.f32.partialorder %v1099_v43, 0.0  ;;  %v1115_v58 = vmul.f32 0.2, %v1099_v43  ;;  %v901_v47 = vmax.f32 %v800_v23, %v890_v57  ;;  %v946_v24 = vpop.f32.mrf.mxu3 }
 0x12b   : > { %v791_v32 = vpop.f32.mrf.mxu1 }
 0x12c   : > { %v1123_v12 = vsel %vm1107_vm0, %v1099_v43, %v1115_v58  ;;  %v957_v60 = vmax.f32 %v901_v47, %v946_v24  ;;  %v801_v36 = vmax.f32 %v745_v28, %v791_v32 }
 0x12d   : > { %v1033_v59 = vpop.f32.mrf.mxu0  ;;  %1132 = vst.msk [vmem:[%s1864_s23 + $0x28] sm:$0xff] %vm1126_vm10, %v1123_v12 }
 0x12e   : > { %v1044_v8 = vadd.f32 %v1033_v59, %v957_v60 }
 0x130   : > { %v1100_v33 = vadd.f32 %v1087_v62, %v1044_v8 }
 0x131   : > { %v892_v2 = vpop.f32.mrf.mxu2 }
 0x132   : > { %vm1108_vm1 = vcmp.gt.f32.partialorder %v1100_v33, 0.0  ;;  %v1116_v10 = vmul.f32 0.2, %v1100_v33  ;;  %v902_v38 = vmax.f32 %v801_v36, %v892_v2  ;;  %v948_v26 = vpop.f32.mrf.mxu3 }
 0x134   : > { %v1124_v61 = vsel %vm1108_vm1, %v1100_v33, %v1116_v10  ;;  %v958_v37 = vmax.f32 %v902_v38, %v948_v26 }
 0x135   : > { %1133 = vst.msk [vmem:[%s1864_s23 + $0x30] sm:$0xff] %vm1126_vm10, %v1124_v61  ;;  %v1035_v63 = vpop.f32.mrf.mxu0 }
 0x136   : > { %v1045_v13 = vadd.f32 %v1035_v63, %v958_v37 }
 0x138   : > { %v1101_v15 = vadd.f32 %v1092_v42, %v1045_v13 }
 0x13a   : > { %vm1109_vm2 = vcmp.gt.f32.partialorder %v1101_v15, 0.0  ;;  %v1117_v1 = vmul.f32 0.2, %v1101_v15 }
 0x13c   : > { %v1125_v11 = vsel %vm1109_vm2, %v1101_v15, %v1117_v1 }
 0x13d   : > { %1134 = vst.msk [vmem:[%s1864_s23 + $0x38] sm:$0xff] %vm1126_vm10, %v1125_v11 }
 0x13e PF: > { %s15_s20 = sadd.s32 1, %s1423_s20   ;;  %s1920_s18 = smov %s1419_s19 }
 0x13f   : > { %p12_p5 = scmp.ge.s32.totalorder %s15_s20, 4   ;;  %s1921_s19 = smov %s1923_s21 }
 0x141   :  { %14 = sbr.rel (!%p12_p5) target bundleno = 2 (0x2), region = 73 }

</bundles_post_ra>
